<compile_context>
chip_gen: v7x
topology: tpu7x:2x2x1
jax: 0.10.0
libtpu: 0.0.40
codegen_flags: <defaults>
</compile_context>

<pallas_src>
import jax
import jax.numpy as jnp
from jax.experimental import pallas as pl
from jax.experimental.pallas import tpu as pltpu


# ---------------------------------------------------------------------------
# Kernels: one grid step == one batch sample, everything lane-dense.
# ---------------------------------------------------------------------------

def _trunk(patch_ref, cw_ref, cb_ref):
    """conv-as-matmul + bias + ReLU + in-kernel global average pool.

    patch_ref: (1, K, P) bf16  im2col patches, K on sublanes, P=H*W on lanes
    cw_ref:    (C, K)    bf16  conv weight as matmul operand
    cb_ref:    (C, 1)    f32   conv bias (column, broadcasts over lanes)
    returns:   (C, 1)    f32   pooled features
    """
    feat = jnp.dot(cw_ref[...], patch_ref[0],
                   preferred_element_type=jnp.float32)            # (C, P) f32
    feat = jnp.maximum(feat + cb_ref[...], 0.0)                   # bias + ReLU
    # Average pool: cross-lane reduction on the XLU, stays in f32 (no bf16
    # round-trip, no pool-matrix operand).
    return jnp.mean(feat, axis=-1, keepdims=True)                 # (C, 1)


def _embedding(pooled, ew_ref, eb_ref):
    """Linear(C -> E): broadcast-multiply + sublane reduce (VPU/XLU, f32)."""
    # pooled (C,1) * ew (C,E) -> (C,E); sum over C -> (1,E)
    emb = jnp.sum(pooled * ew_ref[...], axis=0, keepdims=True)
    return emb + eb_ref[...]                                      # (1, E)


def speaker_embed_kernel(patch_ref, cw_ref, cb_ref, ew_ref, eb_ref, emb_ref):
    pooled = _trunk(patch_ref, cw_ref, cb_ref)
    emb_ref[0] = _embedding(pooled, ew_ref, eb_ref)


def speaker_fused_kernel(label_ref,                    # scalar prefetch (SMEM)
                         patch_ref, cw_ref, cb_ref, ew_ref, eb_ref,
                         clw_ref, clb_ref,
                         emb_ref, loss_ref):
    """Trunk + embedding + softmax cross-entropy, both written in one pass."""
    b = pl.program_id(0)
    pooled = _trunk(patch_ref, cw_ref, cb_ref)
    emb = _embedding(pooled, ew_ref, eb_ref)                      # (1, E)
    emb_ref[0] = emb
    logits = (jnp.dot(emb, clw_ref[...],
                      preferred_element_type=jnp.float32)
              + clb_ref[...])                                     # (1, nC)
    m = jnp.max(logits, axis=-1, keepdims=True)
    lse = m + jnp.log(jnp.sum(jnp.exp(logits - m), axis=-1, keepdims=True))
    cls_ids = jax.lax.broadcasted_iota(jnp.int32, logits.shape, 1)
    onehot = (cls_ids == label_ref[b]).astype(jnp.float32)
    picked = jnp.sum(logits * onehot, axis=-1, keepdims=True)
    loss_ref[0] = lse - picked                                    # (1, 1)


# ---------------------------------------------------------------------------
# pallas_call wrappers (batch grid, parallel semantics)
# ---------------------------------------------------------------------------

def _compiler_params():
    return pltpu.CompilerParams(
        dimension_semantics=("parallel",),   # batch axis -> megacore-splittable
        vmem_limit_bytes=32 * 1024 * 1024)


def speaker_embed(patches_t, cw, cb, ew, eb):
    B, K, P = patches_t.shape
    C, E = ew.shape
    flops = 2 * B * (C * K * P + C * E)
    bytes_accessed = (patches_t.size * 2 + cw.size * 2
                      + (cb.size + ew.size + eb.size + B * E) * 4)
    emb3 = pl.pallas_call(
        speaker_embed_kernel,
        out_shape=jax.ShapeDtypeStruct((B, 1, E), jnp.float32),
        grid_spec=pltpu.PrefetchScalarGridSpec(
            num_scalar_prefetch=0,
            grid=(B,),
            in_specs=[
                pl.BlockSpec((1, K, P), lambda b: (b, 0, 0)),   # patches
                pl.BlockSpec((C, K), lambda b: (0, 0)),         # conv weight
                pl.BlockSpec((C, 1), lambda b: (0, 0)),         # conv bias
                pl.BlockSpec((C, E), lambda b: (0, 0)),         # emb weight
                pl.BlockSpec((1, E), lambda b: (0, 0)),         # emb bias
            ],
            out_specs=pl.BlockSpec((1, 1, E), lambda b: (b, 0, 0)),
        ),
        compiler_params=_compiler_params(),
        cost_estimate=pl.CostEstimate(flops=int(flops), transcendentals=0,
                                      bytes_accessed=int(bytes_accessed)),
    )(patches_t, cw, cb, ew, eb)
    return emb3[:, 0, :]                                          # (B, E)


def speaker_fused(labels, patches_t, cw, cb, ew, eb, clw, clb):
    B, K, P = patches_t.shape
    C, E = ew.shape
    nC = clw.shape[1]
    flops = 2 * B * (C * K * P + C * E + E * nC)
    transcendentals = B * (nC + 1)
    bytes_accessed = (patches_t.size * 2 + cw.size * 2 + labels.size * 4
                      + (cb.size + ew.size + eb.size + clw.size + clb.size
                         + B * E + B) * 4)
    emb3, loss3 = pl.pallas_call(
        speaker_fused_kernel,
        out_shape=(jax.ShapeDtypeStruct((B, 1, E), jnp.float32),
                   jax.ShapeDtypeStruct((B, 1, 1), jnp.float32)),
        grid_spec=pltpu.PrefetchScalarGridSpec(
            num_scalar_prefetch=1,            # labels -> SMEM
            grid=(B,),
            in_specs=[
                pl.BlockSpec((1, K, P), lambda b, lab: (b, 0, 0)),
                pl.BlockSpec((C, K), lambda b, lab: (0, 0)),
                pl.BlockSpec((C, 1), lambda b, lab: (0, 0)),
                pl.BlockSpec((C, E), lambda b, lab: (0, 0)),
                pl.BlockSpec((1, E), lambda b, lab: (0, 0)),
                pl.BlockSpec((E, nC), lambda b, lab: (0, 0)),
                pl.BlockSpec((1, nC), lambda b, lab: (0, 0)),
            ],
            out_specs=[
                pl.BlockSpec((1, 1, E), lambda b, lab: (b, 0, 0)),
                pl.BlockSpec((1, 1, 1), lambda b, lab: (b, 0, 0)),
            ],
        ),
        compiler_params=_compiler_params(),
        cost_estimate=pl.CostEstimate(flops=int(flops),
                                      transcendentals=int(transcendentals),
                                      bytes_accessed=int(bytes_accessed)),
    )(labels, patches_t, cw, cb, ew, eb, clw, clb)
    return emb3[:, 0, :], loss3[:, 0, 0]


# ---------------------------------------------------------------------------
# Glue: transposed im2col + parameter container
# ---------------------------------------------------------------------------

def im2col_3x3_pad1_T(x):
    """x: (B, Cin, H, W) NCHW -> transposed patches (B, Cin*9, H*W).

    K = Cin*9 sits on the sublane axis and P = H*W on the lane axis so the
    conv is one lane-dense (C,K)x(K,P) MXU matmul.  Tap ordering (cin major,
    kh*3+kw minor) matches conv_w.reshape(Cout, Cin*9).
    """
    B, Cin, H, W = x.shape
    xp = jnp.pad(x, ((0, 0), (0, 0), (1, 1), (1, 1)))
    taps = []
    for i in range(3):
        for j in range(3):
            taps.append(xp[:, :, i:i + H, j:j + W])
    p = jnp.stack(taps, axis=2)              # (B, Cin, 9, H, W)
    return p.reshape(B, Cin * 9, H * W)


class SpeakerNetPallas:
    def __init__(self, key, cin=4, cconv=8, emb_dim=32, n_classes=10):
        ks = jax.random.split(key, 6)
        self.conv_w = 0.1 * jax.random.normal(ks[0], (cconv, cin, 3, 3), jnp.float32)
        self.conv_b = 0.1 * jax.random.normal(ks[1], (cconv,), jnp.float32)
        self.emb_w = 0.1 * jax.random.normal(ks[2], (cconv, emb_dim), jnp.float32)
        self.emb_b = 0.1 * jax.random.normal(ks[3], (emb_dim,), jnp.float32)
        self.cls_w = 0.1 * jax.random.normal(ks[4], (emb_dim, n_classes), jnp.float32)
        self.cls_b = 0.1 * jax.random.normal(ks[5], (n_classes,), jnp.float32)

        # Kernel-boundary layouts: bf16 only for the big streamed operands
        # (patches, conv weight); everything downstream of the MXU stays f32.
        self.cw2d_bf16 = self.conv_w.reshape(cconv, -1).astype(jnp.bfloat16)  # (C, K)
        self.cb_col = self.conv_b.reshape(-1, 1)                              # (C, 1)
        self.eb_row = self.emb_b.reshape(1, -1)                               # (1, E)
        self.clb_row = self.cls_b.reshape(1, -1)                              # (1, nC)

        # Whole forward (im2col pads/slices + pallas_call + squeeze/mean)
        # under one jit so the surrounding ops fuse with the custom call.
        self._embed_jit = jax.jit(self._embed_impl)
        self._loss_jit = jax.jit(self._loss_impl)

    # __S__.forward(data)
    def _embed_impl(self, data):
        patches_t = im2col_3x3_pad1_T(data).astype(jnp.bfloat16)
        return speaker_embed(patches_t, self.cw2d_bf16, self.cb_col,
                             self.emb_w, self.eb_row)

    # __S__.forward(data) + __L__.forward(outp, label), fused in one kernel.
    def _loss_impl(self, data, label):
        patches_t = im2col_3x3_pad1_T(data).astype(jnp.bfloat16)
        _emb, per_sample = speaker_fused(label.astype(jnp.int32), patches_t,
                                         self.cw2d_bf16, self.cb_col,
                                         self.emb_w, self.eb_row,
                                         self.cls_w, self.clb_row)
        # CrossEntropyLoss(reduction='mean'); the embedding is produced by the
        # same kernel, so paths that need both never recompute the trunk.
        return jnp.mean(per_sample)

    def forward(self, data, label=None):
        if label is None:
            return self._embed_jit(data)
        return self._loss_jit(data, label)

    __call__ = forward

    # Pure-JAX float32 reference (sanity check only).
    def forward_ref(self, data, label=None):
        patches_t = im2col_3x3_pad1_T(data)                          # (B, K, P)
        w2d = self.conv_w.reshape(self.conv_w.shape[0], -1)          # (C, K)
        feat = jnp.einsum('ck,bkp->bcp', w2d, patches_t)
        feat = jnp.maximum(feat + self.conv_b.reshape(1, -1, 1), 0.0)
        pooled = feat.mean(axis=-1)                                  # (B, C)
        emb = pooled @ self.emb_w + self.emb_b                       # (B, E)
        if label is None:
            return emb
        logits = emb @ self.cls_w + self.cls_b
        lse = jax.nn.logsumexp(logits, axis=-1)
        picked = jnp.take_along_axis(logits, label.reshape(-1, 1), axis=-1)[:, 0]
        return jnp.mean(lse - picked)


# ---------------------------------------------------------------------------

if __name__ == "__main__":
    key = jax.random.PRNGKey(0)
    k_x, k_lab, k_par = jax.random.split(key, 3)

    # PyTorch NCHW input: (batch=2, channels=4, 16, 16)
    x = jax.random.normal(k_x, (2, 4, 16, 16), jnp.float32)
    labels = jax.random.randint(k_lab, (2,), 0, 10).astype(jnp.int32)

    net = SpeakerNetPallas(k_par)

    emb = net.forward(x)            # label is None -> embeddings (2, 32)
    loss = net.forward(x, labels)   # with label    -> scalar CE loss
    jax.block_until_ready((emb, loss))

    assert emb.shape == (2, 32)
    assert loss.shape == ()

    # Sanity check against the f32 reference (kernel conv matmul uses bf16
    # operands with f32 accumulation; everything else is f32).
    emb_ref = net.forward_ref(x)
    loss_ref = net.forward_ref(x, labels)
    assert jnp.allclose(emb, emb_ref, rtol=5e-2, atol=5e-2)
    assert jnp.allclose(loss, loss_ref, rtol=5e-2, atol=5e-2)

    print("KERNEL_OK")
</pallas_src>

<mosaic_0001>
module attributes {stable_mosaic.version = 11 : i64} {
  func.func @speaker_embed_kernel(%arg0: i32, %arg1: memref<1x36x256xbf16, #tpu.memory_space<vmem>>, %arg2: memref<8x36xbf16, #tpu.memory_space<vmem>>, %arg3: memref<8x1xf32, #tpu.memory_space<vmem>>, %arg4: memref<8x32xf32, #tpu.memory_space<vmem>>, %arg5: memref<1x32xf32, #tpu.memory_space<vmem>>, %arg6: memref<1x1x32xf32, #tpu.memory_space<vmem>>) attributes {dimension_semantics = [#tpu.dimension_semantics<parallel>], iteration_bounds = array<i64: 2>, scalar_prefetch = 0 : i64, scratch_operands = 0 : i64, tpu.core_type = #tpu.core_type<tc>, window_params = [{transform_indices = @transform_0, window_bounds = array<i64: 1, 36, 256>}, {pipeline_mode = #tpu.pipeline_mode<synchronous>, transform_indices = @transform_1, window_bounds = array<i64: 8, 36>}, {pipeline_mode = #tpu.pipeline_mode<synchronous>, transform_indices = @transform_2, window_bounds = array<i64: 8, 1>}, {pipeline_mode = #tpu.pipeline_mode<synchronous>, transform_indices = @transform_3, window_bounds = array<i64: 8, 32>}, {pipeline_mode = #tpu.pipeline_mode<synchronous>, transform_indices = @transform_4, window_bounds = array<i64: 1, 32>}, {transform_indices = @transform_5, window_bounds = array<i64: 1, 1, 32>}]} {
    %c0 = arith.constant 0 : index
    %c0_0 = arith.constant 0 : index
    %0 = vector.load %arg2[%c0, %c0_0] : memref<8x36xbf16, #tpu.memory_space<vmem>>, vector<8x36xbf16>
    %c0_1 = arith.constant 0 : index
    %c0_2 = arith.constant 0 : index
    %c0_3 = arith.constant 0 : index
    %1 = vector.load %arg1[%c0_1, %c0_2, %c0_3] : memref<1x36x256xbf16, #tpu.memory_space<vmem>>, vector<1x36x256xbf16>
    %2 = vector.shape_cast %1 : vector<1x36x256xbf16> to vector<36x256xbf16>
    %cst = arith.constant dense<0.000000e+00> : vector<8x256xf32>
    %3 = tpu.matmul %0, %2, %cst {dimension_numbers = #tpu.dot_dimension_numbers<[1], [0], [0], [1], [0, 0, 1, 1], [], []>} : vector<8x36xbf16>, vector<36x256xbf16>, vector<8x256xf32> -> vector<8x256xf32>
    %c0_4 = arith.constant 0 : index
    %c0_5 = arith.constant 0 : index
    %4 = vector.load %arg3[%c0_4, %c0_5] : memref<8x1xf32, #tpu.memory_space<vmem>>, vector<8x1xf32>
    %5 = vector.broadcast %4 : vector<8x1xf32> to vector<8x256xf32>
    %6 = arith.addf %3, %5 : vector<8x256xf32>
    %cst_6 = arith.constant 0.000000e+00 : f32
    %7 = vector.broadcast %cst_6 : f32 to vector<8x256xf32>
    %8 = arith.maximumf %6, %7 : vector<8x256xf32>
    %cst_7 = arith.constant dense<0.000000e+00> : vector<8xf32>
    %9 = vector.multi_reduction <add>, %8, %cst_7 [1] : vector<8x256xf32> to vector<8xf32>
    %10 = vector.shape_cast %9 : vector<8xf32> to vector<8x1xf32>
    %cst_8 = arith.constant 2.560000e+02 : f32
    %11 = vector.broadcast %cst_8 : f32 to vector<8x1xf32>
    %12 = arith.divf %10, %11 : vector<8x1xf32>
    %c0_9 = arith.constant 0 : index
    %c0_10 = arith.constant 0 : index
    %13 = vector.load %arg4[%c0_9, %c0_10] : memref<8x32xf32, #tpu.memory_space<vmem>>, vector<8x32xf32>
    %14 = vector.broadcast %12 : vector<8x1xf32> to vector<8x32xf32>
    %15 = arith.mulf %14, %13 : vector<8x32xf32>
    %cst_11 = arith.constant dense<0.000000e+00> : vector<32xf32>
    %16 = vector.multi_reduction <add>, %15, %cst_11 [0] : vector<8x32xf32> to vector<32xf32>
    %17 = vector.shape_cast %16 : vector<32xf32> to vector<1x32xf32>
    %c0_12 = arith.constant 0 : index
    %c0_13 = arith.constant 0 : index
    %18 = vector.load %arg5[%c0_12, %c0_13] : memref<1x32xf32, #tpu.memory_space<vmem>>, vector<1x32xf32>
    %19 = arith.addf %17, %18 : vector<1x32xf32>
    %c0_14 = arith.constant 0 : index
    %c0_15 = arith.constant 0 : index
    %c0_16 = arith.constant 0 : index
    %20 = vector.load %arg6[%c0_14, %c0_15, %c0_16] : memref<1x1x32xf32, #tpu.memory_space<vmem>>, vector<1x1x32xf32>
    %21 = vector.shape_cast %20 : vector<1x1x32xf32> to vector<1x32xf32>
    %22 = vector.shape_cast %19 : vector<1x32xf32> to vector<1x1x32xf32>
    tpu.vector_store %arg6[%c0_14, %c0_15, %c0_16], %22 {strides = array<i32>} : memref<1x1x32xf32, #tpu.memory_space<vmem>>, vector<1x1x32xf32>,
    return
  }
  func.func @transform_0(%arg0: i32) -> (i32, i32, i32) {
    %c0_i32 = arith.constant 0 : i32
    %c0_i32_0 = arith.constant 0 : i32
    %c0_i32_1 = arith.constant 0 : i32
    return %arg0, %c0_i32, %c0_i32_0 : i32, i32, i32
  }
  func.func @transform_1(%arg0: i32) -> (i32, i32) {
    %c0_i32 = arith.constant 0 : i32
    %c0_i32_0 = arith.constant 0 : i32
    %c0_i32_1 = arith.constant 0 : i32
    return %c0_i32, %c0_i32_0 : i32, i32
  }
  func.func @transform_2(%arg0: i32) -> (i32, i32) {
    %c0_i32 = arith.constant 0 : i32
    %c0_i32_0 = arith.constant 0 : i32
    %c0_i32_1 = arith.constant 0 : i32
    return %c0_i32, %c0_i32_0 : i32, i32
  }
  func.func @transform_3(%arg0: i32) -> (i32, i32) {
    %c0_i32 = arith.constant 0 : i32
    %c0_i32_0 = arith.constant 0 : i32
    %c0_i32_1 = arith.constant 0 : i32
    return %c0_i32, %c0_i32_0 : i32, i32
  }
  func.func @transform_4(%arg0: i32) -> (i32, i32) {
    %c0_i32 = arith.constant 0 : i32
    %c0_i32_0 = arith.constant 0 : i32
    %c0_i32_1 = arith.constant 0 : i32
    return %c0_i32, %c0_i32_0 : i32, i32
  }
  func.func @transform_5(%arg0: i32) -> (i32, i32, i32) {
    %c0_i32 = arith.constant 0 : i32
    %c0_i32_0 = arith.constant 0 : i32
    %c0_i32_1 = arith.constant 0 : i32
    return %arg0, %c0_i32, %c0_i32_0 : i32, i32, i32
  }
}

</mosaic_0001>

<bundles_post_ra>
// kernel: _embed_impl.1
= control target key start
LH: loop header
LB: loop body
LE: loop exit
PB: predicated region body
PF: predicated region fallthrough
CT: control target
= control target key end

     0   :  { %10 = vsyncpa [#allocation3], 0  ;;  %s675_s0 = inlined_call_operand.vmem [shape: bf16[2,36,256], index: 0, kind: input, shape index: {}]   ;;  %s676_s1 = inlined_call_operand.vmem [shape: bf16[8,36], index: 1, kind: input, shape index: {}]   ;;  %s677_s2 = inlined_call_operand.vmem [shape: f32[8,1], index: 2, kind: input, shape index: {}]   ;;  %s678_s3 = inlined_call_operand.vmem [shape: f32[8,32], index: 3, kind: input, shape index: {}]   ;;  %s679_s4 = inlined_call_operand.vmem [shape: f32[1,32], index: 4, kind: input, shape index: {}]   ;;  %s680_s5 = inlined_call_operand.hbm [shape: f32[2,1,32], index: 5, kind: output, shape index: {}]  }
   0x1   :  { %12 = vsyncpa [#allocation3 + $0x1], 0  ;;  %s563_s18 = smov 0   ;;  %s565_s19 = smov 0  }
   0x2   :  { %s567_s20 = smov 0   ;;  %s569_s21 = smov 0  }
   0x3 LB: > { %s584_s22 = sadd.s32 4294967295, %s529_s21   ;;  %s401_s23 = sadd.s32 4294967294, %s529_s21   ;;  %s529_s21 = sphi %s569_s21, %s686_s21   ;;  %s525_s20 = sphi %s567_s20, %s685_s20   ;;  %s521_s19 = sphi %s565_s19, %s684_s19   ;;  %s517_s18 = sphi %s563_s18, %s683_s18  }
   0x4   : > { %s588_s24 = sadd.s32 1, %s529_s21   ;;  %s135_s25 = sadd.s32 1, %s525_s20 }
   0x5   : > { %s132_s26 = ssub.s32 %s529_s21, %s588_s24  ;;  %p145_p0 = scmp.ne.s32.totalorder %s525_s20, %s521_s19 }
   0x6   : > { %p133_p1 = scmp.eq.s32.totalorder %s132_s26, 0  ;;  %p146_p2 = scmp.eq.s32.totalorder %s584_s22, 1 }
   0x7   : > { %p151_p3 = scmp.ne.s32.totalorder %s521_s19, %s517_s18  ;;  %p152_p4 = scmp.eq.s32.totalorder %s401_s23, 1 }
   0x8   : > { %s599_s27 = scalar_select %p133_p1, %s525_s20, %s135_s25  }
   0x9   : > { %p601_p5 = por %p146_p2, %p145_p0  ;;  %p605_p6 = por %p152_p4, %p151_p3 }
   0xa   : > { %p404_p7 = scmp.ge.s32.totalorder %s529_s21, 1  ;;  %p190_p8 = scmp.lt.s32.totalorder %s529_s21, 3 }
   0xc   : > { %p191_p9 = pnand %p404_p7, %p190_p8 }
   0xd   : > { %p217_p10 = scmp.lt.s32.totalorder (!%p191_p9), %s584_s22, 1  ;;  %v531_v0 = vmov (!%p191_p9), 0   ;;  %v229_v1 = vld [vmem:[%s677_s2] sm:$0xff] (!%p191_p9)  ;;  %vm264_vm0 = vcmask (!%p191_p9), 1041408   ;;  %vm260_vm1 = vcmask (!%p191_p9), 293888   ;;  %vm321_vm2 = vcmask (!%p191_p9), 261120  }
   0xe   : > { %194 = sbr.rel (%p191_p9) target bundleno = 433 (0x1b1), region = 40  ;;  %303 = vmatprep.mubr.bf16.mxu0 (!%p191_p9), %v531_v0  ;;  %458 = vset.pattern.permute.xlu0 (!%p191_p9), %v531_v0  ;;  %v223_v10 = vld [vmem:[%s676_s1] sm:$0xf] (!%p191_p9)  ;;  %s215_s16 = sand.u32 (!%p191_p9), 1, %s521_s19   ;;  %vm331_vm3 = vcmask (!%p191_p9), 253952  }
   0xf   : > { %232 = vperm.xlu0 (!%p191_p9), %458, %v229_v1   ;;  %v319_v21 = vld [vmem:[%s678_s3] sm:$0xff] (!%p191_p9)  ;;  %s414_s25 = sshll.u32 (!%p191_p9), %s584_s22, 4  ;;  %s216_s26 = scalar_lea.vmem (!%p191_p9), [#allocation2], %s215_s16 }
  0x10   : > { %v329_v31 = vld [vmem:[%s679_s4] sm:$0x1] (!%p191_p9)  ;;  %s346_s30 = sshll.u32 (!%p191_p9), %s216_s26, 4  ;;  %s334_s9 = scalar_lea.sflag (!%p191_p9), [#allocation3], %s215_s16  ;;  %s635_s30 = int_to_ptr.vmem [resolvable:$true] %s346_s30 }
  0x11   : > { %s467_s10 = scalar_lea.vmem (!%p191_p9), %s635_s30, 16 }
  0x12   : > { %p468_p11 = scmp.ne.s32.totalorder (!%p191_p9), %s635_s30, %s467_s10 }
  0x14   : > { %p469_p12 = pnand (!%p191_p9), %p468_p11, %p601_p5 }
  0x15   : > { %s218_s7 = scalar_select %p217_p10, %s584_s22, 1 }
  0x16   : > { %p470_p13 = pneg %p469_p12  ;;  %s532_s22 = smov [#allocation2]  }
  0x17   : > { %s417_s8 = smul.u32 40, %s218_s7 }
  0x19   : > { %s221_s11 = scalar_lea.vmem %s675_s0, %s417_s8  ;;  %s633_s8 = scalar_lea.hbm %s680_s5, %s414_s25 }
  0x1a   : > { %v459_v2 = vld [vmem:[%s221_s11 + $0x4] ss:$8 sps:$4 sm:$0xff]   ;;  %v461_v3 = vld [vmem:[%s221_s11] ss:$8 sps:$4 sm:$0xff]   ;;  %v462_v4 = vld [vmem:[%s221_s11 + $0x14] ss:$8 sps:$4 sm:$0xff]  }
  0x1b   : > { %271 = vmatprep.subr.bf16.mxu0 %v459_v2  ;;  %v228_v5 = vld [vmem:[%s221_s11 + $0x20] sm:$0x33]  ;;  %v464_v6 = vld [vmem:[%s221_s11 + $0x10] ss:$8 sps:$4 sm:$0xff]   ;;  %s471_s11 = sshll.u32 %s532_s22, 4  ;;  %s472_s11 = int_to_ptr.vmem [resolvable:$false] %s471_s11 }
  0x1c   : > { %272 = vmatpush1.bf16.msra.mxu0 %v461_v3  ;;  %v411_v7 = vcombine.high %v228_v5, %v228_v5  ;;  %v410_v8 = vcombine.low %v228_v5, %v228_v5  ;;  %s473_s12 = scalar_lea.vmem %s472_s11, 32  ;;  %p474_p0 = scmp.lt.s32.totalorder %s635_s30, %s472_s11 }
  0x1d   : > { %273 = vmatprep.subr.bf16.mxu0 %v462_v4  ;;  %p475_p1 = scmp.lt.s32.totalorder %s473_s12, %s467_s10 }
  0x1e   : > { %v266_v9 = vsel %vm264_vm0, %v410_v8, 0 }
  0x1f   : > { %p476_p2 = por %p475_p1, %p474_p0 }
  0x20   : > { %274 = vmatpush1.bf16.msra.mxu0 %v464_v6 }
  0x21   : > { %412 = vmatprep.subr.msk.bf16.mxu0 %vm264_vm0, %v411_v7  ;;  %p477_p3 = pnand %p476_p2, %p470_p13 }
  0x24   : > { %276 = vmatpush1.bf16.msra.mxu0 %v266_v9 }
  0x27   : > { %413 = vmatmul.mubr.msk.bf16.vlgmr.msra.gmra.mrb[0].mxu0 %vm260_vm1, %v223_v10 }
  0x8e   : > { %v233_v11 = vpop.permute.xlu0 %232 }
  0xfa   : > { %v305_v12 = vpop.f32.mrb[0].mxu0 }
  0xfb   : > { %v306_v13 = vadd.f32 %v305_v12, %v233_v11  ;;  %v307_v14 = vpop.f32.mrb[1].mxu0 }
  0xfc   : > { %v308_v15 = vadd.f32 %v307_v14, %v233_v11  ;;  %v309_v16 = vpop.f32.mrb[2].mxu0 }
  0xfd   : > { %v312_v17 = vmax.f32 %v306_v13, 0.0  ;;  %v310_v18 = vpop.f32.mrb[3].mxu0 }
  0xfe   : > { %v313_v19 = vmax.f32 %v308_v15, 0.0 }
 0x100   : > { %v314_v20 = vadd.f32 %v313_v19, %v312_v17 }
 0x102   : > { %315 = vadd.xlane.f32.xlu0 %v314_v20 }
 0x18f   : > { %v316_v22 = vpop.xlane.xlu0 %315 }
 0x190   : > { %v318_v23 = vmul.f32 0.00390625, %v316_v22 }
 0x192   : > { %v320_v24 = vmul.f32 %v319_v21, %v318_v23 }
 0x194   : > { %v322_v25 = vsel %vm321_vm2, %v320_v24, 0.0 }
 0x195   : > { %v323_v26 = vrot.slane %v322_v25, 4 }
 0x197   : > { %v324_v27 = vadd.f32 %v323_v26, %v322_v25 }
 0x199   : > { %v325_v28 = vrot.slane %v324_v27, 2 }
 0x19b   : > { %v326_v29 = vadd.f32 %v325_v28, %v324_v27 }
 0x19d   : > { %v327_v30 = vrot.slane %v326_v29, 1 }
 0x19f   : > { %v328_v32 = vadd.f32 %v327_v30, %v326_v29 }
 0x1a1   : > { %v330_v33 = vadd.f32 %v329_v31, %v328_v32 }
 0x1a3   : > { %332 = vst.msk [vmem:[%s216_s26] sm:$0x1] %vm331_vm3, %v330_v33 }
 0x1a4   : > { %480 = shalt.err (!%p477_p3)
}
 0x1a5   : > { %s481_s13 = scalar_lea.hbm %s633_s8, 16  ;;  %s485_s16 = scalar_lea.hbm %s680_s5, 32 }
 0x1a6   : > { %p482_p4 = scmp.ne.s32.totalorder %s633_s8, %s481_s13  ;;  %p486_p9 = scmp.lt.u32.totalorder %s633_s8, %s680_s5 }
 0x1a7   : > { %p487_p10 = scmp.lt.u32.totalorder %s485_s16, %s481_s13  ;;  %p489_p12 = scmp.lt.u32.totalorder %s481_s13, %s633_s8 }
 0x1a8   : > { %p483_p7 = pnand %p482_p4, %p601_p5 }
 0x1a9   : > { %p488_p11 = por %p487_p10, %p486_p9 }
 0x1aa   : > { %p484_p8 = pneg %p483_p7 }
 0x1ab   : > { %p490_p13 = por %p489_p12, %p488_p11 }
 0x1ad   : > { %p491_p0 = pnand %p490_p13, %p484_p8 }
 0x1af   : > { %494 = shalt.err (!%p491_p0)
}
 0x1b0   : > { %418 = dma.vmem_to_hbm [thread:$0]  (%p601_p5), %s635_s30, 16, %s633_s8, %s334_s9  }
 0x1b1 PF: > { %p424_p1 = scmp.ge.s32.totalorder %s529_s21, 2  ;;  %s358_s25 = sand.u32 1, %s517_s18  }
 0x1b2   : > { %s359_s26 = scalar_lea.sflag [#allocation3], %s358_s25 }
 0x1b3   : > { %p421_p2 = pnand %p424_p1, %p605_p6 }
 0x1b5   : > { %512 = dma.done.wait (!%p421_p2), %s359_s26, 16  }
 0x1b6   : > { %514 = vsyncadd (!%p421_p2), %s359_s26, 4294967280  ;;  %p15_p3 = scmp.ge.s32.totalorder %s588_s24, 4   ;;  %s683_s18 = smov %s521_s19 }
 0x1b7   : > { %s684_s19 = smov %s525_s20  ;;  %s685_s20 = smov %s599_s27 }
 0x1b8   : > { %s686_s21 = smov %s588_s24  ;;  %17 = sbr.rel (!%p15_p3) target bundleno = 3 (0x3), region = 75 }
 0x1bf   :  { %363 = vsyncpa [#allocation3], 1 }
 0x1c0   :  { %365 = vsyncpa [#allocation3 + $0x1], 1 }

</bundles_post_ra>
